<compile_context>
chip_gen: v6e
topology: v6e:2x2x1
jax: 0.10.0
libtpu: 0.0.40
codegen_flags: <defaults>
</compile_context>

<pallas_src>
import functools

import jax
import jax.numpy as jnp
import numpy as np
from jax.experimental import pallas as pl
from jax.experimental.pallas import tpu as pltpu

BN_EPS = 1e-5
_TM_MAX = 2048    # max rows of M per tile (bigger tiles amortize per-step cost)
_LANE = 128       # pad C_out to the lane width (dense vst on the output)
_SUBLANE = 16     # bf16 sublane packing granularity for M tiles
_VMEM_LIMIT = 48 << 20   # safe on v7x (64 MiB physical), generous on v5e/v6e


def _round_up(x, m):
    return (x + m - 1) // m * m


# ---------------------------------------------------------------------------
# Pass 1: im2col matmul (MXU) -> per-tile partial BN statistics ONLY.
# ---------------------------------------------------------------------------
def _stats_kernel(patches_ref, w_ref, stats_ref):
    # patches_ref: (tm, K) bf16   w_ref: (K, C2p) bf16 (resident)
    y = jnp.dot(patches_ref[...], w_ref[...],
                preferred_element_type=jnp.float32)            # (tm, C2p) f32
    stats_ref[0:1, :] = jnp.sum(y, axis=0, keepdims=True)      # sum
    stats_ref[1:2, :] = jnp.sum(y * y, axis=0, keepdims=True)  # sum of squares


# ---------------------------------------------------------------------------
# Pass 2: recompute matmul + fused normalize (precomputed scale/shift) + ReLU.
# ---------------------------------------------------------------------------
def _matmul_bn_relu_kernel(patches_ref, w_ref, scale_ref, shift_ref, out_ref):
    y = jnp.dot(patches_ref[...], w_ref[...],
                preferred_element_type=jnp.float32)            # (tm, C2p) f32
    out_ref[...] = jnp.maximum(y * scale_ref[...] + shift_ref[...],
                               0.0).astype(out_ref.dtype)


def _im2col_nhwc(x_nhwc, k, s, p):
    """Glue: pad + extract patches. Returns (M, k*k*C) and output spatial dims."""
    n, h, w, c = x_nhwc.shape
    xp = jnp.pad(x_nhwc, ((0, 0), (p, p), (p, p), (0, 0)))
    ho = (h + 2 * p - k) // s + 1
    wo = (w + 2 * p - k) // s + 1
    pieces = [xp[:, i:i + ho * s:s, j:j + wo * s:s, :]
              for i in range(k) for j in range(k)]
    patches = pieces[0] if len(pieces) == 1 else jnp.concatenate(pieces, axis=-1)
    return patches.reshape(n * ho * wo, k * k * c), ho, wo


@functools.partial(jax.jit, static_argnames=("k", "s", "p"))
def conv_bn_relu(x_nchw, w_oihw, gamma, beta, *, k, s, p):
    """x_nchw: (N, C_in, H, W);  w_oihw: (C_out, C_in, k, k)."""
    n, c1, h, w = x_nchw.shape
    c2 = w_oihw.shape[0]

    # ---- glue: NCHW -> NHWC (bf16 early to halve im2col traffic), im2col ----
    x_nhwc = jnp.transpose(x_nchw, (0, 2, 3, 1)).astype(jnp.bfloat16)
    patches, ho, wo = _im2col_nhwc(x_nhwc, k, s, p)           # (M, K) bf16
    m_rows, k_dim = patches.shape

    # ---- pad only C_out to the lane width; choose the M tiling ----
    c2p = _round_up(c2, _LANE)
    num_tiles = pl.cdiv(m_rows, _TM_MAX)
    if num_tiles % 2 == 1 and m_rows >= 2 * _SUBLANE:
        num_tiles += 1          # even grid -> both v7x TensorCores stay busy
    tm = _round_up(pl.cdiv(m_rows, num_tiles), _SUBLANE)
    m_pad = tm * num_tiles

    # K stays unpadded: the (8,128) rule is satisfied by full-extent dims, and
    # padding it 32x'd the dominant HBM stream for the default k=1, C_in=4.
    patches = jnp.pad(patches, ((0, m_pad - m_rows), (0, 0)))
    w_mat = jnp.transpose(w_oihw, (2, 3, 1, 0)).reshape(k_dim, c2)
    w_mat = jnp.pad(w_mat, ((0, 0), (0, c2p - c2))).astype(jnp.bfloat16)
    gamma_p = jnp.pad(gamma.astype(jnp.float32), (0, c2p - c2))
    beta_p = jnp.pad(beta.astype(jnp.float32), (0, c2p - c2))

    patches_spec = pl.BlockSpec((tm, k_dim), lambda i: (i, 0))     # walk M
    weight_spec = pl.BlockSpec((k_dim, c2p), lambda i: (0, 0))     # resident

    # ---- pass 1: tiled matmul -> partial statistics (tiny output) ----
    cost1 = pl.CostEstimate(
        flops=2 * m_pad * k_dim * c2p + 3 * m_pad * c2p,
        transcendentals=0,
        bytes_accessed=(m_pad * k_dim * 2 + k_dim * c2p * 2
                        + num_tiles * 2 * c2p * 4))
    stats = pl.pallas_call(
        _stats_kernel,
        out_shape=jax.ShapeDtypeStruct((num_tiles, 2, c2p), jnp.float32),
        grid=(num_tiles,),
        in_specs=[patches_spec, weight_spec],
        out_specs=pl.BlockSpec((None, 2, c2p), lambda i: (i, 0, 0)),
        compiler_params=pltpu.CompilerParams(
            dimension_semantics=("parallel",),
            vmem_limit_bytes=_VMEM_LIMIT),
        cost_estimate=cost1,
    )(patches, w_mat)

    # ---- finalize BN statistics (tiny (2, C2p) reduce, stays in XLA) ----
    tot = jnp.sum(stats, axis=0)                              # (2, c2p)
    mean = tot[0] / m_rows                                    # padded rows are 0
    var = jnp.maximum(tot[1] / m_rows - mean * mean, 0.0)     # biased variance
    inv = jax.lax.rsqrt(var + BN_EPS)
    scale = (gamma_p * inv).reshape(1, c2p)
    shift = (beta_p - mean * gamma_p * inv).reshape(1, c2p)

    # ---- pass 2: recompute matmul + fused normalize + ReLU ----
    cost2 = pl.CostEstimate(
        flops=2 * m_pad * k_dim * c2p + 3 * m_pad * c2p,
        transcendentals=0,
        bytes_accessed=(m_pad * k_dim * 2 + k_dim * c2p * 2
                        + 2 * c2p * 4 + m_pad * c2p * 4))
    out_flat = pl.pallas_call(
        _matmul_bn_relu_kernel,
        out_shape=jax.ShapeDtypeStruct((m_pad, c2p), jnp.float32),
        grid=(num_tiles,),
        in_specs=[
            patches_spec,
            weight_spec,
            pl.BlockSpec((1, c2p), lambda i: (0, 0)),
            pl.BlockSpec((1, c2p), lambda i: (0, 0)),
        ],
        out_specs=pl.BlockSpec((tm, c2p), lambda i: (i, 0)),
        compiler_params=pltpu.CompilerParams(
            dimension_semantics=("parallel",),
            vmem_limit_bytes=_VMEM_LIMIT),
        cost_estimate=cost2,
    )(patches, w_mat, scale, shift)

    # ---- glue: drop padding, (M, C_out) -> NHWC -> NCHW ----
    out_nhwc = out_flat[:m_rows, :c2].reshape(n, ho, wo, c2)
    return jnp.transpose(out_nhwc, (0, 3, 1, 2))


def _reference(x_nchw, w_oihw, gamma, beta, *, k, s, p):
    """Pure-JAX reference of the PyTorch forward (training-mode BN).

    Uses the same bf16 matmul inputs / f32 accumulation as the kernel so the
    comparison is apples-to-apples."""
    xb = x_nchw.astype(jnp.bfloat16)
    wb = w_oihw.astype(jnp.bfloat16)
    y = jax.lax.conv_general_dilated(
        xb, wb, window_strides=(s, s), padding=[(p, p), (p, p)],
        dimension_numbers=("NCHW", "OIHW", "NCHW"),
        preferred_element_type=jnp.float32)
    mean = jnp.mean(y, axis=(0, 2, 3), keepdims=True)
    var = jnp.mean((y - mean) ** 2, axis=(0, 2, 3), keepdims=True)
    y_hat = (y - mean) * jax.lax.rsqrt(var + BN_EPS)
    g = gamma.reshape(1, -1, 1, 1).astype(jnp.float32)
    b = beta.reshape(1, -1, 1, 1).astype(jnp.float32)
    return jnp.maximum(y_hat * g + b, 0.0)


if __name__ == "__main__":
    # Module hyper-params (defaults of Conv.__init__): k=1, s=1, p=1
    N, C1, C2, H, W = 2, 4, 8, 16, 16
    K, S, P = 1, 1, 1

    key = jax.random.PRNGKey(0)
    kx, kw = jax.random.split(key)
    x = jax.random.normal(kx, (N, C1, H, W), dtype=jnp.float32)
    # Conv2d weight (C_out, C_in, k, k), bias=False; BN gamma=1, beta=0 (init).
    w = jax.random.normal(kw, (C2, C1, K, K), dtype=jnp.float32) * 0.1
    gamma = jnp.ones((C2,), dtype=jnp.float32)
    beta = jnp.zeros((C2,), dtype=jnp.float32)

    out = jax.block_until_ready(conv_bn_relu(x, w, gamma, beta, k=K, s=S, p=P))
    ref = jax.block_until_ready(_reference(x, w, gamma, beta, k=K, s=S, p=P))

    assert out.shape == (N, C2, H + 2 * P - K + 1, W + 2 * P - K + 1), out.shape
    np.testing.assert_allclose(np.asarray(out), np.asarray(ref),
                               rtol=2e-3, atol=2e-3)

    print("KERNEL_OK")
</pallas_src>

<mosaic_0001>
module attributes {stable_mosaic.version = 11 : i64} {
  func.func @_matmul_bn_relu_kernel(%arg0: i32, %arg1: memref<336x4xbf16, #tpu.memory_space<vmem>>, %arg2: memref<4x128xbf16, #tpu.memory_space<vmem>>, %arg3: memref<1x128xf32, #tpu.memory_space<vmem>>, %arg4: memref<1x128xf32, #tpu.memory_space<vmem>>, %arg5: memref<336x128xf32, #tpu.memory_space<vmem>>) attributes {dimension_semantics = [#tpu.dimension_semantics<parallel>], iteration_bounds = array<i64: 2>, scalar_prefetch = 0 : i64, scratch_operands = 0 : i64, tpu.core_type = #tpu.core_type<tc>, window_params = [{transform_indices = @transform_0, window_bounds = array<i64: 336, 4>}, {pipeline_mode = #tpu.pipeline_mode<synchronous>, transform_indices = @transform_1, window_bounds = array<i64: 4, 128>}, {pipeline_mode = #tpu.pipeline_mode<synchronous>, transform_indices = @transform_2, window_bounds = array<i64: 1, 128>}, {pipeline_mode = #tpu.pipeline_mode<synchronous>, transform_indices = @transform_3, window_bounds = array<i64: 1, 128>}, {transform_indices = @transform_4, window_bounds = array<i64: 336, 128>}]} {
    %c0 = arith.constant 0 : index
    %c0_0 = arith.constant 0 : index
    %0 = vector.load %arg1[%c0, %c0_0] : memref<336x4xbf16, #tpu.memory_space<vmem>>, vector<336x4xbf16>
    %c0_1 = arith.constant 0 : index
    %c0_2 = arith.constant 0 : index
    %1 = vector.load %arg2[%c0_1, %c0_2] : memref<4x128xbf16, #tpu.memory_space<vmem>>, vector<4x128xbf16>
    %cst = arith.constant dense<0.000000e+00> : vector<336x128xf32>
    %2 = tpu.matmul %0, %1, %cst {dimension_numbers = #tpu.dot_dimension_numbers<[1], [0], [0], [1], [0, 0, 1, 1], [], []>} : vector<336x4xbf16>, vector<4x128xbf16>, vector<336x128xf32> -> vector<336x128xf32>
    %c0_3 = arith.constant 0 : index
    %c0_4 = arith.constant 0 : index
    %3 = vector.load %arg3[%c0_3, %c0_4] : memref<1x128xf32, #tpu.memory_space<vmem>>, vector<1x128xf32>
    %4 = vector.broadcast %3 : vector<1x128xf32> to vector<336x128xf32>
    %5 = arith.mulf %2, %4 : vector<336x128xf32>
    %c0_5 = arith.constant 0 : index
    %c0_6 = arith.constant 0 : index
    %6 = vector.load %arg4[%c0_5, %c0_6] : memref<1x128xf32, #tpu.memory_space<vmem>>, vector<1x128xf32>
    %7 = vector.broadcast %6 : vector<1x128xf32> to vector<336x128xf32>
    %8 = arith.addf %5, %7 : vector<336x128xf32>
    %cst_7 = arith.constant 0.000000e+00 : f32
    %9 = vector.broadcast %cst_7 : f32 to vector<336x128xf32>
    %10 = arith.maximumf %8, %9 : vector<336x128xf32>
    %c0_8 = arith.constant 0 : index
    %c0_9 = arith.constant 0 : index
    %11 = vector.load %arg5[%c0_8, %c0_9] : memref<336x128xf32, #tpu.memory_space<vmem>>, vector<336x128xf32>
    tpu.vector_store %arg5[%c0_8, %c0_9], %10 {strides = array<i32>} : memref<336x128xf32, #tpu.memory_space<vmem>>, vector<336x128xf32>,
    return
  }
  func.func @transform_0(%arg0: i32) -> (i32, i32) {
    %c0_i32 = arith.constant 0 : i32
    %c0_i32_0 = arith.constant 0 : i32
    return %arg0, %c0_i32 : i32, i32
  }
  func.func @transform_1(%arg0: i32) -> (i32, i32) {
    %c0_i32 = arith.constant 0 : i32
    %c0_i32_0 = arith.constant 0 : i32
    %c0_i32_1 = arith.constant 0 : i32
    return %c0_i32, %c0_i32_0 : i32, i32
  }
  func.func @transform_2(%arg0: i32) -> (i32, i32) {
    %c0_i32 = arith.constant 0 : i32
    %c0_i32_0 = arith.constant 0 : i32
    %c0_i32_1 = arith.constant 0 : i32
    return %c0_i32, %c0_i32_0 : i32, i32
  }
  func.func @transform_3(%arg0: i32) -> (i32, i32) {
    %c0_i32 = arith.constant 0 : i32
    %c0_i32_0 = arith.constant 0 : i32
    %c0_i32_1 = arith.constant 0 : i32
    return %c0_i32, %c0_i32_0 : i32, i32
  }
  func.func @transform_4(%arg0: i32) -> (i32, i32) {
    %c0_i32 = arith.constant 0 : i32
    %c0_i32_0 = arith.constant 0 : i32
    return %arg0, %c0_i32 : i32, i32
  }
}

module attributes {stable_mosaic.version = 11 : i64} {
  func.func @_stats_kernel(%arg0: i32, %arg1: memref<336x4xbf16, #tpu.memory_space<vmem>>, %arg2: memref<4x128xbf16, #tpu.memory_space<vmem>>, %arg3: memref<1x2x128xf32, #tpu.memory_space<vmem>>) attributes {dimension_semantics = [#tpu.dimension_semantics<parallel>], iteration_bounds = array<i64: 2>, scalar_prefetch = 0 : i64, scratch_operands = 0 : i64, tpu.core_type = #tpu.core_type<tc>, window_params = [{transform_indices = @transform_0, window_bounds = array<i64: 336, 4>}, {pipeline_mode = #tpu.pipeline_mode<synchronous>, transform_indices = @transform_1, window_bounds = array<i64: 4, 128>}, {transform_indices = @transform_2, window_bounds = array<i64: 1, 2, 128>}]} {
    %c0 = arith.constant 0 : index
    %c0_0 = arith.constant 0 : index
    %0 = vector.load %arg1[%c0, %c0_0] : memref<336x4xbf16, #tpu.memory_space<vmem>>, vector<336x4xbf16>
    %c0_1 = arith.constant 0 : index
    %c0_2 = arith.constant 0 : index
    %1 = vector.load %arg2[%c0_1, %c0_2] : memref<4x128xbf16, #tpu.memory_space<vmem>>, vector<4x128xbf16>
    %cst = arith.constant dense<0.000000e+00> : vector<336x128xf32>
    %2 = tpu.matmul %0, %1, %cst {dimension_numbers = #tpu.dot_dimension_numbers<[1], [0], [0], [1], [0, 0, 1, 1], [], []>} : vector<336x4xbf16>, vector<4x128xbf16>, vector<336x128xf32> -> vector<336x128xf32>
    %cst_3 = arith.constant dense<0.000000e+00> : vector<128xf32>
    %3 = vector.multi_reduction <add>, %2, %cst_3 [0] : vector<336x128xf32> to vector<128xf32>
    %4 = vector.shape_cast %3 : vector<128xf32> to vector<1x128xf32>
    %c0_4 = arith.constant 0 : index
    %c0_5 = arith.constant 0 : index
    %c0_6 = arith.constant 0 : index
    %5 = vector.load %arg3[%c0_4, %c0_5, %c0_6] : memref<1x2x128xf32, #tpu.memory_space<vmem>>, vector<1x1x128xf32>
    %6 = vector.shape_cast %5 : vector<1x1x128xf32> to vector<1x128xf32>
    %7 = vector.shape_cast %4 : vector<1x128xf32> to vector<1x1x128xf32>
    tpu.vector_store %arg3[%c0_4, %c0_5, %c0_6], %7 {strides = array<i32>} : memref<1x2x128xf32, #tpu.memory_space<vmem>>, vector<1x1x128xf32>,
    %8 = arith.mulf %2, %2 : vector<336x128xf32>
    %cst_7 = arith.constant dense<0.000000e+00> : vector<128xf32>
    %9 = vector.multi_reduction <add>, %8, %cst_7 [0] : vector<336x128xf32> to vector<128xf32>
    %10 = vector.shape_cast %9 : vector<128xf32> to vector<1x128xf32>
    %c0_8 = arith.constant 0 : index
    %c1 = arith.constant 1 : index
    %c0_9 = arith.constant 0 : index
    %11 = vector.load %arg3[%c0_8, %c1, %c0_9] : memref<1x2x128xf32, #tpu.memory_space<vmem>>, vector<1x1x128xf32>
    %12 = vector.shape_cast %11 : vector<1x1x128xf32> to vector<1x128xf32>
    %13 = vector.shape_cast %10 : vector<1x128xf32> to vector<1x1x128xf32>
    tpu.vector_store %arg3[%c0_8, %c1, %c0_9], %13 {strides = array<i32>} : memref<1x2x128xf32, #tpu.memory_space<vmem>>, vector<1x1x128xf32>,
    return
  }
  func.func @transform_0(%arg0: i32) -> (i32, i32) {
    %c0_i32 = arith.constant 0 : i32
    %c0_i32_0 = arith.constant 0 : i32
    return %arg0, %c0_i32 : i32, i32
  }
  func.func @transform_1(%arg0: i32) -> (i32, i32) {
    %c0_i32 = arith.constant 0 : i32
    %c0_i32_0 = arith.constant 0 : i32
    %c0_i32_1 = arith.constant 0 : i32
    return %c0_i32, %c0_i32_0 : i32, i32
  }
  func.func @transform_2(%arg0: i32) -> (i32, i32, i32) {
    %c0_i32 = arith.constant 0 : i32
    %c0_i32_0 = arith.constant 0 : i32
    %c0_i32_1 = arith.constant 0 : i32
    return %arg0, %c0_i32, %c0_i32_0 : i32, i32, i32
  }
}

</mosaic_0001>

<bundles_post_ra>
// kernel: conv_bn_relu.3
= control target key start
LH: loop header
LB: loop body
LE: loop exit
PB: predicated region body
PF: predicated region fallthrough
CT: control target
= control target key end

     0   :  { %s1086_s15 = smov 0   ;;  %s1336_s0 = inlined_call_operand.vmem [shape: bf16[672,4], index: 0, kind: input, shape index: {}]   ;;  %s1337_s1 = inlined_call_operand.vmem [shape: bf16[4,128], index: 1, kind: input, shape index: {}]   ;;  %s1338_s2 = inlined_call_operand.vmem [shape: f32[1,128], index: 2, kind: input, shape index: {}]   ;;  %s1339_s3 = inlined_call_operand.vmem [shape: f32[1,128], index: 3, kind: input, shape index: {}]   ;;  %s1340_s4 = inlined_call_operand.vmem [shape: f32[672,128], index: 4, kind: output, shape index: {}]  }
   0x1 LB: > { %s857_s16 = sadd.s32 4294967295, %s1057_s15   ;;  %p861_p0 = scmp.ge.s32.totalorder %s1057_s15, 1  ;;  %s1057_s15 = sphi %s1086_s15, %s14_s15  }
   0x2   : > { %p163_p1 = scmp.lt.s32.totalorder %s1057_s15, 3 }
   0x4   : > { %p164_p2 = pnand %p861_p0, %p163_p1 }
   0x5   : > { %s189_s19 = smul.u32 (!%p164_p2), 42, %s857_s16 }
   0x6   : > { %167 = sbr.rel (%p164_p2) target bundleno = 300 (0x12c), region = 36 }
   0x7   : > { %p190_p3 = scmp.lt.s32.totalorder (!%p164_p2), %s189_s19, 83 }
   0xb   : > { %v244_v0 = vld [vmem:[%s1337_s1] sm:$0x3]  ;;  %vm414_vm0 = vcmask 1041408   ;;  %v1059_v1 = vmov 0.0   ;;  %vm1060_vm1 = vmmov 0   ;;  %s1342_s19 = smov (!%p190_p3, %s189_s19), 83 }
   0xc   : > { %932 = vmatprep.subr.bf16.mxu0 %v1059_v1  ;;  %v416_v2 = vsel %vm414_vm0, %v244_v0, 0  ;;  %1018 = vmatprep.subr.bf16.mxu1 %v1059_v1  ;;  %s862_s20 = sshll.u32 %s1342_s19, 2  ;;  %vm350_vm2 = vcmask 31744   ;;  %v1194_v24 = vld [vmem:[%s1338_s2] ss:$0 sm:$0xff]  ;;  %s863_s28 = sshll.u32 %s1342_s19, 3 }
   0xd   : > { %933 = vmatpush3.bf16.msra.mxu0 %v416_v2  ;;  %1019 = vmatpush3.bf16.msra.mxu1 %v416_v2  ;;  %s1109_s23 = scalar_lea.vmem %s1336_s0, %s862_s20  ;;  %v1199_v26 = vld [vmem:[%s1339_s3] ss:$0 sm:$0xff]  ;;  %s1208_s5 = scalar_lea.vmem %s1340_s4, %s863_s28 }
   0xe   : > { %934 = vmatprep.mubr.msk.bf16.mxu0 %vm1060_vm1, %v1059_v1  ;;  %978 = vmatprep.mubr.msk.bf16.mxu1 %vm1060_vm1, %v1059_v1  ;;  %v1030_v3 = vld [vmem:[%s1109_s23] sm:$0xff]   ;;  %v1031_v4 = vld [vmem:[%s1109_s23 + $0x58] sm:$0xff]   ;;  %v1032_v5 = vld [vmem:[%s1109_s23 + $0x8] sm:$0xff]  }
   0xf   : > { %v1033_v6 = vld [vmem:[%s1109_s23 + $0x60] sm:$0xff]   ;;  %v1034_v7 = vld [vmem:[%s1109_s23 + $0x10] sm:$0xff]   ;;  %v1035_v8 = vld [vmem:[%s1109_s23 + $0x68] sm:$0xff]  }
  0x10   : > { %935 = vmatmul.mubr.msk.bf16.vlgmr.msra.gmra.mxu0 %vm350_vm2, %v1030_v3  ;;  %979 = vmatmul.mubr.msk.bf16.vlgmr.msra.gmra.mxu1 %vm350_vm2, %v1031_v4  ;;  %v1036_v9 = vld [vmem:[%s1109_s23 + $0x18] sm:$0xff]   ;;  %v1037_v10 = vld [vmem:[%s1109_s23 + $0x70] sm:$0xff]   ;;  %v1038_v11 = vld [vmem:[%s1109_s23 + $0x20] sm:$0xff]  }
  0x11   : > { %938 = vmatprep.mubr.msk.bf16.mxu0 %vm1060_vm1, %v1059_v1  ;;  %982 = vmatprep.mubr.msk.bf16.mxu1 %vm1060_vm1, %v1059_v1  ;;  %v1039_v12 = vld [vmem:[%s1109_s23 + $0x78] sm:$0xff]   ;;  %v1040_v13 = vld [vmem:[%s1109_s23 + $0x28] sm:$0xff]   ;;  %v1041_v14 = vld [vmem:[%s1109_s23 + $0x80] sm:$0xff]  }
  0x12   : > { %v1042_v15 = vld [vmem:[%s1109_s23 + $0x30] sm:$0xff]   ;;  %v1043_v16 = vld [vmem:[%s1109_s23 + $0x88] sm:$0xff]   ;;  %v1044_v17 = vld [vmem:[%s1109_s23 + $0x38] sm:$0xff]  }
  0x13   : > { %v1045_v18 = vld [vmem:[%s1109_s23 + $0x90] sm:$0xff]   ;;  %v1046_v19 = vld [vmem:[%s1109_s23 + $0x40] sm:$0xff]   ;;  %v1047_v20 = vld [vmem:[%s1109_s23 + $0x98] sm:$0xff]  }
  0x14   : > { %v1048_v21 = vld [vmem:[%s1109_s23 + $0x48] sm:$0xff]   ;;  %v1049_v22 = vld [vmem:[%s1109_s23 + $0xa0] sm:$0xff]   ;;  %v1050_v23 = vld [vmem:[%s1109_s23 + $0x50] sm:$0xff]  }
  0x18   : > { %939 = vmatmul.mubr.msk.bf16.gmra.mxu0 %vm350_vm2, %v1032_v5  ;;  %983 = vmatmul.mubr.msk.bf16.gmra.mxu1 %vm350_vm2, %v1033_v6 }
  0x19   : > { %942 = vmatprep.mubr.msk.bf16.mxu0 %vm1060_vm1, %v1059_v1  ;;  %986 = vmatprep.mubr.msk.bf16.mxu1 %vm1060_vm1, %v1059_v1 }
  0x20   : > { %943 = vmatmul.mubr.msk.bf16.gmra.mxu0 %vm350_vm2, %v1034_v7  ;;  %987 = vmatmul.mubr.msk.bf16.gmra.mxu1 %vm350_vm2, %v1035_v8 }
  0x21   : > { %946 = vmatprep.mubr.msk.bf16.mxu0 %vm1060_vm1, %v1059_v1  ;;  %990 = vmatprep.mubr.msk.bf16.mxu1 %vm1060_vm1, %v1059_v1 }
  0x28   : > { %947 = vmatmul.mubr.msk.bf16.gmra.mxu0 %vm350_vm2, %v1036_v9  ;;  %991 = vmatmul.mubr.msk.bf16.gmra.mxu1 %vm350_vm2, %v1037_v10 }
  0x29   : > { %950 = vmatprep.mubr.msk.bf16.mxu0 %vm1060_vm1, %v1059_v1  ;;  %994 = vmatprep.mubr.msk.bf16.mxu1 %vm1060_vm1, %v1059_v1 }
  0x30   : > { %951 = vmatmul.mubr.msk.bf16.gmra.mxu0 %vm350_vm2, %v1038_v11  ;;  %995 = vmatmul.mubr.msk.bf16.gmra.mxu1 %vm350_vm2, %v1039_v12 }
  0x31   : > { %954 = vmatprep.mubr.msk.bf16.mxu0 %vm1060_vm1, %v1059_v1  ;;  %998 = vmatprep.mubr.msk.bf16.mxu1 %vm1060_vm1, %v1059_v1 }
  0x38   : > { %955 = vmatmul.mubr.msk.bf16.gmra.mxu0 %vm350_vm2, %v1040_v13  ;;  %999 = vmatmul.mubr.msk.bf16.gmra.mxu1 %vm350_vm2, %v1041_v14 }
  0x39   : > { %958 = vmatprep.mubr.msk.bf16.mxu0 %vm1060_vm1, %v1059_v1  ;;  %1002 = vmatprep.mubr.msk.bf16.mxu1 %vm1060_vm1, %v1059_v1 }
  0x40   : > { %959 = vmatmul.mubr.msk.bf16.gmra.mxu0 %vm350_vm2, %v1042_v15  ;;  %1003 = vmatmul.mubr.msk.bf16.gmra.mxu1 %vm350_vm2, %v1043_v16 }
  0x41   : > { %962 = vmatprep.mubr.msk.bf16.mxu0 %vm1060_vm1, %v1059_v1  ;;  %1006 = vmatprep.mubr.msk.bf16.mxu1 %vm1060_vm1, %v1059_v1 }
  0x48   : > { %963 = vmatmul.mubr.msk.bf16.gmra.mxu0 %vm350_vm2, %v1044_v17  ;;  %1007 = vmatmul.mubr.msk.bf16.gmra.mxu1 %vm350_vm2, %v1045_v18 }
  0x49   : > { %966 = vmatprep.mubr.msk.bf16.mxu0 %vm1060_vm1, %v1059_v1  ;;  %1010 = vmatprep.mubr.msk.bf16.mxu1 %vm1060_vm1, %v1059_v1 }
  0x50   : > { %967 = vmatmul.mubr.msk.bf16.gmra.mxu0 %vm350_vm2, %v1046_v19  ;;  %1011 = vmatmul.mubr.msk.bf16.gmra.mxu1 %vm350_vm2, %v1047_v20 }
  0x51   : > { %970 = vmatprep.mubr.msk.bf16.mxu0 %vm1060_vm1, %v1059_v1  ;;  %1014 = vmatprep.mubr.msk.bf16.mxu1 %vm1060_vm1, %v1059_v1 }
  0x58   : > { %971 = vmatmul.mubr.msk.bf16.gmra.mxu0 %vm350_vm2, %v1048_v21  ;;  %1015 = vmatmul.mubr.msk.bf16.gmra.mxu1 %vm350_vm2, %v1049_v22 }
  0x59   : > { %974 = vmatprep.mubr.msk.bf16.mxu0 %vm1060_vm1, %v1059_v1 }
  0x60   : > { %975 = vmatmul.mubr.msk.bf16.gmra.mxu0 %vm350_vm2, %v1050_v23 }
  0xd0   : > { %v452_v25 = vpop.f32.mrf.mxu0  ;;  %v540_v28 = vpop.f32.mrf.mxu1 }
  0xd1   : > { %v626_v27 = vmul.f32 %v1194_v24, %v452_v25  ;;  %v648_v30 = vmul.f32 %v1194_v24, %v540_v28 }
  0xd2   : > { %v936_v29 = vpop.f32.mrf.mxu0  ;;  %v980_v32 = vpop.f32.mrf.mxu1 }
  0xd3   : > { %v675_v31 = vadd.f32 %v1199_v26, %v626_v27  ;;  %v697_v33 = vadd.f32 %v1199_v26, %v648_v30 }
  0xd4   : > { %v455_v34 = vpop.f32.mrf.mxu0  ;;  %v543_v37 = vpop.f32.mrf.mxu1 }
  0xd5   : > { %v717_v35 = vmax.f32 %v675_v31, 0.0  ;;  %v627_v36 = vmul.f32 %v1194_v24, %v455_v34  ;;  %v739_v38 = vmax.f32 %v697_v33, 0.0  ;;  %v649_v40 = vmul.f32 %v1194_v24, %v543_v37 }
  0xd6   : > { %v937_v39 = vpop.f32.mrf.mxu0  ;;  %v981_v42 = vpop.f32.mrf.mxu1 }
  0xd7   : > { %759 = vst [vmem:[%s1208_s5] sm:$0xff] %v717_v35  ;;  %v676_v41 = vadd.f32 %v1199_v26, %v627_v36  ;;  %781 = vst [vmem:[%s1208_s5 + $0xb0] sm:$0xff] %v739_v38  ;;  %v698_v43 = vadd.f32 %v1199_v26, %v649_v40 }
  0xd8   : > { %v460_v44 = vpop.f32.mrf.mxu0  ;;  %v548_v47 = vpop.f32.mrf.mxu1 }
  0xd9   : > { %v718_v45 = vmax.f32 %v676_v41, 0.0  ;;  %v628_v46 = vmul.f32 %v1194_v24, %v460_v44  ;;  %v740_v48 = vmax.f32 %v698_v43, 0.0  ;;  %v650_v50 = vmul.f32 %v1194_v24, %v548_v47 }
  0xda   : > { %v940_v49 = vpop.f32.mrf.mxu0  ;;  %v984_v52 = vpop.f32.mrf.mxu1 }
  0xdb   : > { %760 = vst [vmem:[%s1208_s5 + $0x8] sm:$0xff] %v718_v45  ;;  %v677_v51 = vadd.f32 %v1199_v26, %v628_v46  ;;  %782 = vst [vmem:[%s1208_s5 + $0xb8] sm:$0xff] %v740_v48  ;;  %v699_v53 = vadd.f32 %v1199_v26, %v650_v50 }
  0xdc   : > { %v463_v54 = vpop.f32.mrf.mxu0  ;;  %v551_v57 = vpop.f32.mrf.mxu1 }
  0xdd   : > { %v719_v55 = vmax.f32 %v677_v51, 0.0  ;;  %v629_v56 = vmul.f32 %v1194_v24, %v463_v54  ;;  %v741_v58 = vmax.f32 %v699_v53, 0.0  ;;  %v651_v60 = vmul.f32 %v1194_v24, %v551_v57 }
  0xde   : > { %v941_v59 = vpop.f32.mrf.mxu0  ;;  %v985_v62 = vpop.f32.mrf.mxu1 }
  0xdf   : > { %761 = vst [vmem:[%s1208_s5 + $0x10] sm:$0xff] %v719_v55  ;;  %v678_v61 = vadd.f32 %v1199_v26, %v629_v56  ;;  %783 = vst [vmem:[%s1208_s5 + $0xc0] sm:$0xff] %v741_v58  ;;  %v700_v63 = vadd.f32 %v1199_v26, %v651_v60 }
  0xe0   : > { %v468_v0 = vpop.f32.mrf.mxu0  ;;  %v556_v3 = vpop.f32.mrf.mxu1 }
  0xe1   : > { %v720_v1 = vmax.f32 %v678_v61, 0.0  ;;  %v630_v2 = vmul.f32 %v1194_v24, %v468_v0  ;;  %v742_v4 = vmax.f32 %v700_v63, 0.0  ;;  %v652_v6 = vmul.f32 %v1194_v24, %v556_v3 }
  0xe2   : > { %v944_v5 = vpop.f32.mrf.mxu0  ;;  %v988_v8 = vpop.f32.mrf.mxu1 }
  0xe3   : > { %762 = vst [vmem:[%s1208_s5 + $0x18] sm:$0xff] %v720_v1  ;;  %v679_v7 = vadd.f32 %v1199_v26, %v630_v2  ;;  %784 = vst [vmem:[%s1208_s5 + $0xc8] sm:$0xff] %v742_v4  ;;  %v701_v9 = vadd.f32 %v1199_v26, %v652_v6 }
  0xe4   : > { %v471_v10 = vpop.f32.mrf.mxu0  ;;  %v559_v13 = vpop.f32.mrf.mxu1 }
  0xe5   : > { %v721_v11 = vmax.f32 %v679_v7, 0.0  ;;  %v631_v12 = vmul.f32 %v1194_v24, %v471_v10  ;;  %v743_v14 = vmax.f32 %v701_v9, 0.0  ;;  %v653_v16 = vmul.f32 %v1194_v24, %v559_v13 }
  0xe6   : > { %v945_v15 = vpop.f32.mrf.mxu0  ;;  %v989_v18 = vpop.f32.mrf.mxu1 }
  0xe7   : > { %763 = vst [vmem:[%s1208_s5 + $0x20] sm:$0xff] %v721_v11  ;;  %v680_v17 = vadd.f32 %v1199_v26, %v631_v12  ;;  %785 = vst [vmem:[%s1208_s5 + $0xd0] sm:$0xff] %v743_v14  ;;  %v702_v19 = vadd.f32 %v1199_v26, %v653_v16 }
  0xe8   : > { %v476_v20 = vpop.f32.mrf.mxu0  ;;  %v564_v23 = vpop.f32.mrf.mxu1 }
  0xe9   : > { %v722_v21 = vmax.f32 %v680_v17, 0.0  ;;  %v632_v22 = vmul.f32 %v1194_v24, %v476_v20  ;;  %v744_v25 = vmax.f32 %v702_v19, 0.0  ;;  %v654_v28 = vmul.f32 %v1194_v24, %v564_v23 }
  0xea   : > { %v948_v27 = vpop.f32.mrf.mxu0  ;;  %v992_v30 = vpop.f32.mrf.mxu1 }
  0xeb   : > { %764 = vst [vmem:[%s1208_s5 + $0x28] sm:$0xff] %v722_v21  ;;  %v681_v29 = vadd.f32 %v1199_v26, %v632_v22  ;;  %786 = vst [vmem:[%s1208_s5 + $0xd8] sm:$0xff] %v744_v25  ;;  %v703_v31 = vadd.f32 %v1199_v26, %v654_v28 }
  0xec   : > { %v479_v32 = vpop.f32.mrf.mxu0  ;;  %v567_v35 = vpop.f32.mrf.mxu1 }
  0xed   : > { %v723_v33 = vmax.f32 %v681_v29, 0.0  ;;  %v633_v34 = vmul.f32 %v1194_v24, %v479_v32  ;;  %v745_v36 = vmax.f32 %v703_v31, 0.0  ;;  %v655_v38 = vmul.f32 %v1194_v24, %v567_v35 }
  0xee   : > { %v949_v37 = vpop.f32.mrf.mxu0  ;;  %v993_v40 = vpop.f32.mrf.mxu1 }
  0xef   : > { %765 = vst [vmem:[%s1208_s5 + $0x30] sm:$0xff] %v723_v33  ;;  %v682_v39 = vadd.f32 %v1199_v26, %v633_v34  ;;  %787 = vst [vmem:[%s1208_s5 + $0xe0] sm:$0xff] %v745_v36  ;;  %v704_v41 = vadd.f32 %v1199_v26, %v655_v38 }
  0xf0   : > { %v484_v42 = vpop.f32.mrf.mxu0  ;;  %v572_v45 = vpop.f32.mrf.mxu1 }
  0xf1   : > { %v724_v43 = vmax.f32 %v682_v39, 0.0  ;;  %v634_v44 = vmul.f32 %v1194_v24, %v484_v42  ;;  %v746_v46 = vmax.f32 %v704_v41, 0.0  ;;  %v656_v48 = vmul.f32 %v1194_v24, %v572_v45 }
  0xf2   : > { %v952_v47 = vpop.f32.mrf.mxu0  ;;  %v996_v50 = vpop.f32.mrf.mxu1 }
  0xf3   : > { %766 = vst [vmem:[%s1208_s5 + $0x38] sm:$0xff] %v724_v43  ;;  %v683_v49 = vadd.f32 %v1199_v26, %v634_v44  ;;  %788 = vst [vmem:[%s1208_s5 + $0xe8] sm:$0xff] %v746_v46  ;;  %v705_v51 = vadd.f32 %v1199_v26, %v656_v48 }
  0xf4   : > { %v487_v52 = vpop.f32.mrf.mxu0  ;;  %v575_v55 = vpop.f32.mrf.mxu1 }
  0xf5   : > { %v725_v53 = vmax.f32 %v683_v49, 0.0  ;;  %v635_v54 = vmul.f32 %v1194_v24, %v487_v52  ;;  %v747_v56 = vmax.f32 %v705_v51, 0.0  ;;  %v657_v58 = vmul.f32 %v1194_v24, %v575_v55 }
  0xf6   : > { %v953_v57 = vpop.f32.mrf.mxu0  ;;  %v997_v60 = vpop.f32.mrf.mxu1 }
  0xf7   : > { %767 = vst [vmem:[%s1208_s5 + $0x40] sm:$0xff] %v725_v53  ;;  %v684_v59 = vadd.f32 %v1199_v26, %v635_v54  ;;  %789 = vst [vmem:[%s1208_s5 + $0xf0] sm:$0xff] %v747_v56  ;;  %v706_v61 = vadd.f32 %v1199_v26, %v657_v58 }
  0xf8   : > { %v492_v62 = vpop.f32.mrf.mxu0  ;;  %v580_v1 = vpop.f32.mrf.mxu1 }
  0xf9   : > { %v726_v63 = vmax.f32 %v684_v59, 0.0  ;;  %v636_v0 = vmul.f32 %v1194_v24, %v492_v62  ;;  %v748_v2 = vmax.f32 %v706_v61, 0.0  ;;  %v658_v4 = vmul.f32 %v1194_v24, %v580_v1 }
  0xfa   : > { %v956_v3 = vpop.f32.mrf.mxu0  ;;  %v1000_v6 = vpop.f32.mrf.mxu1 }
  0xfb   : > { %768 = vst [vmem:[%s1208_s5 + $0x48] sm:$0xff] %v726_v63  ;;  %v685_v5 = vadd.f32 %v1199_v26, %v636_v0  ;;  %790 = vst [vmem:[%s1208_s5 + $0xf8] sm:$0xff] %v748_v2  ;;  %v707_v7 = vadd.f32 %v1199_v26, %v658_v4 }
  0xfc   : > { %v495_v8 = vpop.f32.mrf.mxu0  ;;  %v583_v11 = vpop.f32.mrf.mxu1 }
  0xfd   : > { %v727_v9 = vmax.f32 %v685_v5, 0.0  ;;  %v637_v10 = vmul.f32 %v1194_v24, %v495_v8  ;;  %v749_v12 = vmax.f32 %v707_v7, 0.0  ;;  %v659_v14 = vmul.f32 %v1194_v24, %v583_v11 }
  0xfe   : > { %v957_v13 = vpop.f32.mrf.mxu0  ;;  %v1001_v16 = vpop.f32.mrf.mxu1 }
  0xff   : > { %769 = vst [vmem:[%s1208_s5 + $0x50] sm:$0xff] %v727_v9  ;;  %v686_v15 = vadd.f32 %v1199_v26, %v637_v10  ;;  %791 = vst [vmem:[%s1208_s5 + $0x100] sm:$0xff] %v749_v12  ;;  %v708_v17 = vadd.f32 %v1199_v26, %v659_v14 }
 0x100   : > { %v500_v18 = vpop.f32.mrf.mxu0  ;;  %v588_v21 = vpop.f32.mrf.mxu1 }
 0x101   : > { %v728_v19 = vmax.f32 %v686_v15, 0.0  ;;  %v638_v20 = vmul.f32 %v1194_v24, %v500_v18  ;;  %v750_v22 = vmax.f32 %v708_v17, 0.0  ;;  %v660_v25 = vmul.f32 %v1194_v24, %v588_v21 }
 0x102   : > { %v960_v23 = vpop.f32.mrf.mxu0  ;;  %v1004_v28 = vpop.f32.mrf.mxu1 }
 0x103   : > { %770 = vst [vmem:[%s1208_s5 + $0x58] sm:$0xff] %v728_v19  ;;  %v687_v27 = vadd.f32 %v1199_v26, %v638_v20  ;;  %792 = vst [vmem:[%s1208_s5 + $0x108] sm:$0xff] %v750_v22  ;;  %v709_v29 = vadd.f32 %v1199_v26, %v660_v25 }
 0x104   : > { %v503_v30 = vpop.f32.mrf.mxu0  ;;  %v591_v33 = vpop.f32.mrf.mxu1 }
 0x105   : > { %v729_v31 = vmax.f32 %v687_v27, 0.0  ;;  %v639_v32 = vmul.f32 %v1194_v24, %v503_v30  ;;  %v751_v34 = vmax.f32 %v709_v29, 0.0  ;;  %v661_v36 = vmul.f32 %v1194_v24, %v591_v33 }
 0x106   : > { %v961_v35 = vpop.f32.mrf.mxu0  ;;  %v1005_v38 = vpop.f32.mrf.mxu1 }
 0x107   : > { %771 = vst [vmem:[%s1208_s5 + $0x60] sm:$0xff] %v729_v31  ;;  %v688_v37 = vadd.f32 %v1199_v26, %v639_v32  ;;  %793 = vst [vmem:[%s1208_s5 + $0x110] sm:$0xff] %v751_v34  ;;  %v710_v39 = vadd.f32 %v1199_v26, %v661_v36 }
 0x108   : > { %v508_v40 = vpop.f32.mrf.mxu0  ;;  %v596_v43 = vpop.f32.mrf.mxu1 }
 0x109   : > { %v730_v41 = vmax.f32 %v688_v37, 0.0  ;;  %v640_v42 = vmul.f32 %v1194_v24, %v508_v40  ;;  %v752_v44 = vmax.f32 %v710_v39, 0.0  ;;  %v662_v46 = vmul.f32 %v1194_v24, %v596_v43 }
 0x10a   : > { %v964_v45 = vpop.f32.mrf.mxu0  ;;  %v1008_v48 = vpop.f32.mrf.mxu1 }
 0x10b   : > { %772 = vst [vmem:[%s1208_s5 + $0x68] sm:$0xff] %v730_v41  ;;  %v689_v47 = vadd.f32 %v1199_v26, %v640_v42  ;;  %794 = vst [vmem:[%s1208_s5 + $0x118] sm:$0xff] %v752_v44  ;;  %v711_v49 = vadd.f32 %v1199_v26, %v662_v46 }
 0x10c   : > { %v511_v50 = vpop.f32.mrf.mxu0  ;;  %v599_v53 = vpop.f32.mrf.mxu1 }
 0x10d   : > { %v731_v51 = vmax.f32 %v689_v47, 0.0  ;;  %v641_v52 = vmul.f32 %v1194_v24, %v511_v50  ;;  %v753_v54 = vmax.f32 %v711_v49, 0.0  ;;  %v663_v56 = vmul.f32 %v1194_v24, %v599_v53 }
 0x10e   : > { %v965_v55 = vpop.f32.mrf.mxu0  ;;  %v1009_v58 = vpop.f32.mrf.mxu1 }
 0x10f   : > { %773 = vst [vmem:[%s1208_s5 + $0x70] sm:$0xff] %v731_v51  ;;  %v690_v57 = vadd.f32 %v1199_v26, %v641_v52  ;;  %795 = vst [vmem:[%s1208_s5 + $0x120] sm:$0xff] %v753_v54  ;;  %v712_v59 = vadd.f32 %v1199_v26, %v663_v56 }
 0x110   : > { %v516_v60 = vpop.f32.mrf.mxu0  ;;  %v604_v63 = vpop.f32.mrf.mxu1 }
 0x111   : > { %v732_v61 = vmax.f32 %v690_v57, 0.0  ;;  %v642_v62 = vmul.f32 %v1194_v24, %v516_v60  ;;  %v754_v0 = vmax.f32 %v712_v59, 0.0  ;;  %v664_v2 = vmul.f32 %v1194_v24, %v604_v63 }
 0x112   : > { %v968_v1 = vpop.f32.mrf.mxu0  ;;  %v1012_v4 = vpop.f32.mrf.mxu1 }
 0x113   : > { %774 = vst [vmem:[%s1208_s5 + $0x78] sm:$0xff] %v732_v61  ;;  %v691_v3 = vadd.f32 %v1199_v26, %v642_v62  ;;  %796 = vst [vmem:[%s1208_s5 + $0x128] sm:$0xff] %v754_v0  ;;  %v713_v5 = vadd.f32 %v1199_v26, %v664_v2 }
 0x114   : > { %v519_v6 = vpop.f32.mrf.mxu0  ;;  %v607_v9 = vpop.f32.mrf.mxu1 }
 0x115   : > { %v733_v7 = vmax.f32 %v691_v3, 0.0  ;;  %v643_v8 = vmul.f32 %v1194_v24, %v519_v6  ;;  %v755_v10 = vmax.f32 %v713_v5, 0.0  ;;  %v665_v12 = vmul.f32 %v1194_v24, %v607_v9 }
 0x116   : > { %v969_v11 = vpop.f32.mrf.mxu0  ;;  %v1013_v14 = vpop.f32.mrf.mxu1 }
 0x117   : > { %775 = vst [vmem:[%s1208_s5 + $0x80] sm:$0xff] %v733_v7  ;;  %v692_v13 = vadd.f32 %v1199_v26, %v643_v8  ;;  %797 = vst [vmem:[%s1208_s5 + $0x130] sm:$0xff] %v755_v10  ;;  %v714_v15 = vadd.f32 %v1199_v26, %v665_v12 }
 0x118   : > { %v524_v16 = vpop.f32.mrf.mxu0  ;;  %v612_v19 = vpop.f32.mrf.mxu1 }
 0x119   : > { %v734_v17 = vmax.f32 %v692_v13, 0.0  ;;  %v644_v18 = vmul.f32 %v1194_v24, %v524_v16  ;;  %v756_v20 = vmax.f32 %v714_v15, 0.0  ;;  %v666_v22 = vmul.f32 %v1194_v24, %v612_v19 }
 0x11a   : > { %v972_v21 = vpop.f32.mrf.mxu0  ;;  %v1016_v25 = vpop.f32.mrf.mxu1 }
 0x11b   : > { %776 = vst [vmem:[%s1208_s5 + $0x88] sm:$0xff] %v734_v17  ;;  %v693_v23 = vadd.f32 %v1199_v26, %v644_v18  ;;  %798 = vst [vmem:[%s1208_s5 + $0x138] sm:$0xff] %v756_v20  ;;  %v715_v27 = vadd.f32 %v1199_v26, %v666_v22 }
 0x11c   : > { %v527_v28 = vpop.f32.mrf.mxu0  ;;  %v615_v31 = vpop.f32.mrf.mxu1 }
 0x11d   : > { %v735_v29 = vmax.f32 %v693_v23, 0.0  ;;  %v645_v30 = vmul.f32 %v1194_v24, %v527_v28  ;;  %v757_v32 = vmax.f32 %v715_v27, 0.0  ;;  %v667_v34 = vmul.f32 %v1194_v24, %v615_v31 }
 0x11e   : > { %v973_v33 = vpop.f32.mrf.mxu0  ;;  %v1017_v36 = vpop.f32.mrf.mxu1 }
 0x11f   : > { %777 = vst [vmem:[%s1208_s5 + $0x90] sm:$0xff] %v735_v29  ;;  %v694_v35 = vadd.f32 %v1199_v26, %v645_v30  ;;  %799 = vst [vmem:[%s1208_s5 + $0x140] sm:$0xff] %v757_v32  ;;  %v716_v37 = vadd.f32 %v1199_v26, %v667_v34 }
 0x120   : > { %v532_v38 = vpop.f32.mrf.mxu0 }
 0x121   : > { %v736_v39 = vmax.f32 %v694_v35, 0.0  ;;  %v646_v40 = vmul.f32 %v1194_v24, %v532_v38  ;;  %v758_v41 = vmax.f32 %v716_v37, 0.0 }
 0x122   : > { %v976_v42 = vpop.f32.mrf.mxu0 }
 0x123   : > { %778 = vst [vmem:[%s1208_s5 + $0x98] sm:$0xff] %v736_v39  ;;  %v695_v43 = vadd.f32 %v1199_v26, %v646_v40  ;;  %800 = vst [vmem:[%s1208_s5 + $0x148] sm:$0xff] %v758_v41 }
 0x124   : > { %v535_v44 = vpop.f32.mrf.mxu0 }
 0x125   : > { %v737_v45 = vmax.f32 %v695_v43, 0.0  ;;  %v647_v46 = vmul.f32 %v1194_v24, %v535_v44 }
 0x126   : > { %v977_v47 = vpop.f32.mrf.mxu0 }
 0x127   : > { %779 = vst [vmem:[%s1208_s5 + $0xa0] sm:$0xff] %v737_v45  ;;  %v696_v48 = vadd.f32 %v1199_v26, %v647_v46 }
 0x129   : > { %v738_v49 = vmax.f32 %v696_v48, 0.0 }
 0x12b   : > { %780 = vst [vmem:[%s1208_s5 + $0xa8] sm:$0xff] %v738_v49 }
 0x12c PF: > { %s14_s15 = sadd.s32 1, %s1057_s15  }
 0x12d   : > { %p11_p4 = scmp.ge.s32.totalorder %s14_s15, 4  }
 0x12f   :  { %13 = sbr.rel (!%p11_p4) target bundleno = 1 (0x1), region = 66 }

// kernel: conv_bn_relu.2
= control target key start
LH: loop header
LB: loop body
LE: loop exit
PB: predicated region body
PF: predicated region fallthrough
CT: control target
= control target key end

     0   :  { %s970_s9 = smov 0   ;;  %s1183_s0 = inlined_call_operand.vmem [shape: bf16[672,4], index: 0, kind: input, shape index: {}]   ;;  %s1184_s1 = inlined_call_operand.vmem [shape: bf16[4,128], index: 1, kind: input, shape index: {}]   ;;  %s1185_s2 = inlined_call_operand.vmem [shape: f32[2,2,128], index: 2, kind: output, shape index: {}]  }
   0x1 LB: > { %s976_s10 = sadd.s32 4294967295, %s951_s9   ;;  %p757_p0 = scmp.ge.s32.totalorder %s951_s9, 1  ;;  %s951_s9 = sphi %s970_s9, %s12_s9  }
   0x2   : > { %p113_p1 = scmp.lt.s32.totalorder %s951_s9, 3 }
   0x4   : > { %p114_p2 = pnand %p757_p0, %p113_p1 }
   0x5   : > { %s134_s13 = smul.u32 (!%p114_p2), 42, %s976_s10  ;;  %p140_p4 = scmp.lt.s32.totalorder (!%p114_p2), %s976_s10, 1 }
   0x6   : > { %117 = sbr.rel (%p114_p2) target bundleno = 350 (0x15e), region = 28 }
   0x7   : > { %p135_p3 = scmp.lt.s32.totalorder (!%p114_p2), %s134_s13, 83 }
   0xb   : > { %v187_v0 = vld [vmem:[%s1184_s1] sm:$0x3]  ;;  %vm357_vm0 = vcmask 1041408   ;;  %v953_v1 = vmov 0.0   ;;  %vm954_vm1 = vmmov 0   ;;  %s1187_s13 = smov (!%p135_p3, %s134_s13), 83 }
   0xc   : > { %826 = vmatprep.subr.bf16.mxu0 %v953_v1  ;;  %v359_v2 = vsel %vm357_vm0, %v187_v0, 0  ;;  %828 = vmatprep.mubr.msk.bf16.mxu0 %vm954_vm1, %v953_v1  ;;  %s758_s14 = sshll.u32 %s1187_s13, 2  ;;  %vm293_vm2 = vcmask 31744   ;;  %s1189_s10 = smov (!%p140_p4, %s976_s10), 1 }
   0xd   : > { %827 = vmatpush3.bf16.msra.mxu0 %v359_v2  ;;  %912 = vmatprep.subr.bf16.mxu1 %v953_v1  ;;  %s993_s17 = scalar_lea.vmem %s1183_s0, %s758_s14  ;;  %s759_s18 = sshll.u32 %s1189_s10, 1 }
   0xe   : > { %913 = vmatpush3.bf16.msra.mxu1 %v359_v2  ;;  %872 = vmatprep.mubr.msk.bf16.mxu1 %vm954_vm1, %v953_v1  ;;  %v924_v3 = vld [vmem:[%s993_s17] sm:$0xff]   ;;  %v925_v4 = vld [vmem:[%s993_s17 + $0x8] sm:$0xff]   ;;  %v930_v5 = vld [vmem:[%s993_s17 + $0x58] sm:$0xff]   ;;  %s143_s21 = scalar_lea.vmem %s1185_s2, %s759_s18 }
   0xf   : > { %v932_v6 = vld [vmem:[%s993_s17 + $0x60] sm:$0xff]   ;;  %v926_v7 = vld [vmem:[%s993_s17 + $0x10] sm:$0xff]   ;;  %v934_v8 = vld [vmem:[%s993_s17 + $0x68] sm:$0xff]  }
  0x10   : > { %829 = vmatmul.mubr.msk.bf16.vlgmr.msra.gmra.mxu0 %vm293_vm2, %v924_v3  ;;  %v927_v9 = vld [vmem:[%s993_s17 + $0x18] sm:$0xff]   ;;  %v936_v10 = vld [vmem:[%s993_s17 + $0x70] sm:$0xff]   ;;  %v928_v11 = vld [vmem:[%s993_s17 + $0x20] sm:$0xff]  }
  0x11   : > { %832 = vmatprep.mubr.msk.bf16.mxu0 %vm954_vm1, %v953_v1  ;;  %873 = vmatmul.mubr.msk.bf16.vlgmr.msra.gmra.mxu1 %vm293_vm2, %v930_v5  ;;  %v938_v12 = vld [vmem:[%s993_s17 + $0x78] sm:$0xff]   ;;  %v929_v13 = vld [vmem:[%s993_s17 + $0x28] sm:$0xff]   ;;  %v940_v14 = vld [vmem:[%s993_s17 + $0x80] sm:$0xff]  }
  0x12   : > { %876 = vmatprep.mubr.msk.bf16.mxu1 %vm954_vm1, %v953_v1  ;;  %v931_v15 = vld [vmem:[%s993_s17 + $0x30] sm:$0xff]   ;;  %v941_v16 = vld [vmem:[%s993_s17 + $0x88] sm:$0xff]   ;;  %v933_v17 = vld [vmem:[%s993_s17 + $0x38] sm:$0xff]  }
  0x13   : > { %v942_v18 = vld [vmem:[%s993_s17 + $0x90] sm:$0xff]   ;;  %v935_v19 = vld [vmem:[%s993_s17 + $0x40] sm:$0xff]   ;;  %v943_v20 = vld [vmem:[%s993_s17 + $0x98] sm:$0xff]  }
  0x14   : > { %v937_v21 = vld [vmem:[%s993_s17 + $0x48] sm:$0xff]   ;;  %v944_v22 = vld [vmem:[%s993_s17 + $0xa0] sm:$0xff]   ;;  %v939_v23 = vld [vmem:[%s993_s17 + $0x50] sm:$0xff]  }
  0x18   : > { %833 = vmatmul.mubr.msk.bf16.gmra.mxu0 %vm293_vm2, %v925_v4 }
  0x19   : > { %836 = vmatprep.mubr.msk.bf16.mxu0 %vm954_vm1, %v953_v1  ;;  %877 = vmatmul.mubr.msk.bf16.gmra.mxu1 %vm293_vm2, %v932_v6 }
  0x1a   : > { %880 = vmatprep.mubr.msk.bf16.mxu1 %vm954_vm1, %v953_v1 }
  0x20   : > { %837 = vmatmul.mubr.msk.bf16.gmra.mxu0 %vm293_vm2, %v926_v7 }
  0x21   : > { %840 = vmatprep.mubr.msk.bf16.mxu0 %vm954_vm1, %v953_v1  ;;  %881 = vmatmul.mubr.msk.bf16.gmra.mxu1 %vm293_vm2, %v934_v8 }
  0x22   : > { %884 = vmatprep.mubr.msk.bf16.mxu1 %vm954_vm1, %v953_v1 }
  0x28   : > { %841 = vmatmul.mubr.msk.bf16.gmra.mxu0 %vm293_vm2, %v927_v9 }
  0x29   : > { %844 = vmatprep.mubr.msk.bf16.mxu0 %vm954_vm1, %v953_v1  ;;  %885 = vmatmul.mubr.msk.bf16.gmra.mxu1 %vm293_vm2, %v936_v10 }
  0x2a   : > { %888 = vmatprep.mubr.msk.bf16.mxu1 %vm954_vm1, %v953_v1 }
  0x30   : > { %845 = vmatmul.mubr.msk.bf16.gmra.mxu0 %vm293_vm2, %v928_v11 }
  0x31   : > { %848 = vmatprep.mubr.msk.bf16.mxu0 %vm954_vm1, %v953_v1  ;;  %889 = vmatmul.mubr.msk.bf16.gmra.mxu1 %vm293_vm2, %v938_v12 }
  0x32   : > { %892 = vmatprep.mubr.msk.bf16.mxu1 %vm954_vm1, %v953_v1 }
  0x38   : > { %849 = vmatmul.mubr.msk.bf16.gmra.mxu0 %vm293_vm2, %v929_v13 }
  0x39   : > { %852 = vmatprep.mubr.msk.bf16.mxu0 %vm954_vm1, %v953_v1  ;;  %893 = vmatmul.mubr.msk.bf16.gmra.mxu1 %vm293_vm2, %v940_v14 }
  0x3a   : > { %896 = vmatprep.mubr.msk.bf16.mxu1 %vm954_vm1, %v953_v1 }
  0x40   : > { %853 = vmatmul.mubr.msk.bf16.gmra.mxu0 %vm293_vm2, %v931_v15 }
  0x41   : > { %856 = vmatprep.mubr.msk.bf16.mxu0 %vm954_vm1, %v953_v1  ;;  %897 = vmatmul.mubr.msk.bf16.gmra.mxu1 %vm293_vm2, %v941_v16 }
  0x42   : > { %900 = vmatprep.mubr.msk.bf16.mxu1 %vm954_vm1, %v953_v1 }
  0x48   : > { %857 = vmatmul.mubr.msk.bf16.gmra.mxu0 %vm293_vm2, %v933_v17 }
  0x49   : > { %860 = vmatprep.mubr.msk.bf16.mxu0 %vm954_vm1, %v953_v1  ;;  %901 = vmatmul.mubr.msk.bf16.gmra.mxu1 %vm293_vm2, %v942_v18 }
  0x4a   : > { %904 = vmatprep.mubr.msk.bf16.mxu1 %vm954_vm1, %v953_v1 }
  0x50   : > { %861 = vmatmul.mubr.msk.bf16.gmra.mxu0 %vm293_vm2, %v935_v19 }
  0x51   : > { %864 = vmatprep.mubr.msk.bf16.mxu0 %vm954_vm1, %v953_v1  ;;  %905 = vmatmul.mubr.msk.bf16.gmra.mxu1 %vm293_vm2, %v943_v20 }
  0x52   : > { %908 = vmatprep.mubr.msk.bf16.mxu1 %vm954_vm1, %v953_v1 }
  0x58   : > { %865 = vmatmul.mubr.msk.bf16.gmra.mxu0 %vm293_vm2, %v937_v21 }
  0x59   : > { %868 = vmatprep.mubr.msk.bf16.mxu0 %vm954_vm1, %v953_v1  ;;  %909 = vmatmul.mubr.msk.bf16.gmra.mxu1 %vm293_vm2, %v944_v22 }
  0x60   : > { %869 = vmatmul.mubr.msk.bf16.gmra.mxu0 %vm293_vm2, %v939_v23 }
  0xd0   : > { %v395_v24 = vpop.f32.mrf.mxu0 }
  0xd1   : > { %v1075_v28 = vpop.f32.mrf.mxu1  ;;  %v610_v4 = vmul.f32 %v395_v24, %v395_v24 }
  0xd2   : > { %v830_v25 = vpop.f32.mrf.mxu0 }
  0xd3   : > { %v874_v30 = vpop.f32.mrf.mxu1 }
  0xd4   : > { %v398_v26 = vpop.f32.mrf.mxu0 }
  0xd5   : > { %v1077_v32 = vpop.f32.mrf.mxu1  ;;  %v611_v1 = vmul.f32 %v398_v26, %v398_v26  ;;  %v562_v5 = vadd.f32 %v398_v26, %v395_v24 }
  0xd6   : > { %v831_v27 = vpop.f32.mrf.mxu0 }
  0xd7   : > { %v875_v34 = vpop.f32.mrf.mxu1  ;;  %v652_v9 = vadd.f32 %v611_v1, %v610_v4 }
  0xd8   : > { %v403_v29 = vpop.f32.mrf.mxu0 }
  0xd9   : > { %v1079_v36 = vpop.f32.mrf.mxu1  ;;  %v612_v6 = vmul.f32 %v403_v29, %v403_v29  ;;  %v563_v10 = vadd.f32 %v562_v5, %v403_v29 }
  0xda   : > { %v834_v31 = vpop.f32.mrf.mxu0 }
  0xdb   : > { %v878_v38 = vpop.f32.mrf.mxu1  ;;  %v653_v14 = vadd.f32 %v652_v9, %v612_v6 }
  0xdc   : > { %v406_v33 = vpop.f32.mrf.mxu0 }
  0xdd   : > { %v1081_v40 = vpop.f32.mrf.mxu1  ;;  %v613_v11 = vmul.f32 %v406_v33, %v406_v33  ;;  %v564_v15 = vadd.f32 %v563_v10, %v406_v33 }
  0xde   : > { %v835_v35 = vpop.f32.mrf.mxu0 }
  0xdf   : > { %v879_v42 = vpop.f32.mrf.mxu1  ;;  %v654_v19 = vadd.f32 %v653_v14, %v613_v11 }
  0xe0   : > { %v411_v37 = vpop.f32.mrf.mxu0 }
  0xe1   : > { %v1083_v44 = vpop.f32.mrf.mxu1  ;;  %v614_v16 = vmul.f32 %v411_v37, %v411_v37  ;;  %v565_v20 = vadd.f32 %v564_v15, %v411_v37 }
  0xe2   : > { %v838_v39 = vpop.f32.mrf.mxu0 }
  0xe3   : > { %v882_v46 = vpop.f32.mrf.mxu1  ;;  %v655_v24 = vadd.f32 %v654_v19, %v614_v16 }
  0xe4   : > { %v414_v41 = vpop.f32.mrf.mxu0 }
  0xe5   : > { %v1085_v48 = vpop.f32.mrf.mxu1  ;;  %v615_v21 = vmul.f32 %v414_v41, %v414_v41  ;;  %v566_v25 = vadd.f32 %v565_v20, %v414_v41 }
  0xe6   : > { %v839_v43 = vpop.f32.mrf.mxu0 }
  0xe7   : > { %v883_v50 = vpop.f32.mrf.mxu1  ;;  %v656_v29 = vadd.f32 %v655_v24, %v615_v21 }
  0xe8   : > { %v419_v45 = vpop.f32.mrf.mxu0 }
  0xe9   : > { %v1087_v52 = vpop.f32.mrf.mxu1  ;;  %v616_v26 = vmul.f32 %v419_v45, %v419_v45  ;;  %v567_v31 = vadd.f32 %v566_v25, %v419_v45 }
  0xea   : > { %v842_v47 = vpop.f32.mrf.mxu0 }
  0xeb   : > { %v886_v54 = vpop.f32.mrf.mxu1  ;;  %v657_v38 = vadd.f32 %v656_v29, %v616_v26 }
  0xec   : > { %v422_v49 = vpop.f32.mrf.mxu0 }
  0xed   : > { %v1089_v56 = vpop.f32.mrf.mxu1  ;;  %v617_v34 = vmul.f32 %v422_v49, %v422_v49  ;;  %v568_v39 = vadd.f32 %v567_v31, %v422_v49 }
  0xee   : > { %v843_v51 = vpop.f32.mrf.mxu0 }
  0xef   : > { %v887_v58 = vpop.f32.mrf.mxu1  ;;  %v658_v37 = vadd.f32 %v657_v38, %v617_v34 }
  0xf0   : > { %v427_v53 = vpop.f32.mrf.mxu0 }
  0xf1   : > { %v1091_v60 = vpop.f32.mrf.mxu1  ;;  %v618_v42 = vmul.f32 %v427_v53, %v427_v53  ;;  %v569_v47 = vadd.f32 %v568_v39, %v427_v53 }
  0xf2   : > { %v846_v55 = vpop.f32.mrf.mxu0 }
  0xf3   : > { %v890_v62 = vpop.f32.mrf.mxu1  ;;  %v659_v54 = vadd.f32 %v658_v37, %v618_v42 }
  0xf4   : > { %v430_v57 = vpop.f32.mrf.mxu0 }
  0xf5   : > { %v1093_v0 = vpop.f32.mrf.mxu1  ;;  %v619_v50 = vmul.f32 %v430_v57, %v430_v57  ;;  %v570_v55 = vadd.f32 %v569_v47, %v430_v57 }
  0xf6   : > { %v847_v59 = vpop.f32.mrf.mxu0 }
  0xf7   : > { %v891_v3 = vpop.f32.mrf.mxu1  ;;  %v660_v45 = vadd.f32 %v659_v54, %v619_v50 }
  0xf8   : > { %v435_v61 = vpop.f32.mrf.mxu0 }
  0xf9   : > { %v1095_v8 = vpop.f32.mrf.mxu1  ;;  %v620_v58 = vmul.f32 %v435_v61, %v435_v61 }
  0xfa   : > { %v850_v63 = vpop.f32.mrf.mxu0 }
  0xfb   : > { %v894_v13 = vpop.f32.mrf.mxu1  ;;  %v571_v63 = vadd.f32 %v570_v55, %v435_v61  ;;  %v661_v4 = vadd.f32 %v660_v45, %v620_v58 }
  0xfc   : > { %v438_v2 = vpop.f32.mrf.mxu0 }
  0xfd   : > { %v1097_v18 = vpop.f32.mrf.mxu1  ;;  %v621_v1 = vmul.f32 %v438_v2, %v438_v2  ;;  %v572_v5 = vadd.f32 %v571_v63, %v438_v2 }
  0xfe   : > { %v851_v7 = vpop.f32.mrf.mxu0 }
  0xff   : > { %v895_v23 = vpop.f32.mrf.mxu1  ;;  %v662_v53 = vadd.f32 %v661_v4, %v621_v1 }
 0x100   : > { %v443_v12 = vpop.f32.mrf.mxu0 }
 0x101   : > { %v1099_v30 = vpop.f32.mrf.mxu1  ;;  %v622_v6 = vmul.f32 %v443_v12, %v443_v12  ;;  %v573_v10 = vadd.f32 %v572_v5, %v443_v12 }
 0x102   : > { %v854_v17 = vpop.f32.mrf.mxu0 }
 0x103   : > { %v898_v33 = vpop.f32.mrf.mxu1  ;;  %v663_v14 = vadd.f32 %v662_v53, %v622_v6  ;;  %v632_v53 = vmul.f32 %v1075_v28, %v1075_v28 }
 0x104   : > { %v446_v22 = vpop.f32.mrf.mxu0 }
 0x105   : > { %v1101_v46 = vpop.f32.mrf.mxu1  ;;  %v623_v11 = vmul.f32 %v446_v22, %v446_v22  ;;  %v574_v15 = vadd.f32 %v573_v10, %v446_v22 }
 0x106   : > { %v855_v27 = vpop.f32.mrf.mxu0 }
 0x107   : > { %v899_v41 = vpop.f32.mrf.mxu1  ;;  %v664_v61 = vadd.f32 %v663_v14, %v623_v11 }
 0x108   : > { %v451_v35 = vpop.f32.mrf.mxu0 }
 0x109   : > { %v1103_v62 = vpop.f32.mrf.mxu1  ;;  %v624_v16 = vmul.f32 %v451_v35, %v451_v35  ;;  %v575_v20 = vadd.f32 %v574_v15, %v451_v35  ;;  %v634_v15 = vmul.f32 %v1079_v36, %v1079_v36 }
 0x10a   : > { %v858_v43 = vpop.f32.mrf.mxu0 }
 0x10b   : > { %v902_v49 = vpop.f32.mrf.mxu1  ;;  %v665_v24 = vadd.f32 %v664_v61, %v624_v16  ;;  %v635_v61 = vmul.f32 %v1081_v40, %v1081_v40 }
 0x10c   : > { %v454_v51 = vpop.f32.mrf.mxu0 }
 0x10d   : > { %v1105_v9 = vpop.f32.mrf.mxu1  ;;  %v625_v21 = vmul.f32 %v454_v51, %v454_v51  ;;  %v576_v25 = vadd.f32 %v575_v20, %v454_v51 }
 0x10e   : > { %v859_v59 = vpop.f32.mrf.mxu0 }
 0x10f   : > { %v903_v57 = vpop.f32.mrf.mxu1  ;;  %v666_v12 = vadd.f32 %v665_v24, %v625_v21 }
 0x110   : > { %v459_v3 = vpop.f32.mrf.mxu0 }
 0x111   : > { %v1107_v19 = vpop.f32.mrf.mxu1  ;;  %v626_v26 = vmul.f32 %v459_v3, %v459_v3  ;;  %v577_v31 = vadd.f32 %v576_v25, %v459_v3 }
 0x112   : > { %v862_v7 = vpop.f32.mrf.mxu0 }
 0x113   : > { %v906_v2 = vpop.f32.mrf.mxu1  ;;  %v667_v38 = vadd.f32 %v666_v12, %v626_v26 }
 0x114   : > { %v462_v13 = vpop.f32.mrf.mxu0 }
 0x115   : > { %v1109_v29 = vpop.f32.mrf.mxu1  ;;  %v627_v34 = vmul.f32 %v462_v13, %v462_v13  ;;  %v578_v39 = vadd.f32 %v577_v31, %v462_v13  ;;  %v633_v13 = vmul.f32 %v1077_v32, %v1077_v32 }
 0x116   : > { %v863_v17 = vpop.f32.mrf.mxu0 }
 0x117   : > { %v907_v22 = vpop.f32.mrf.mxu1  ;;  %v668_v35 = vadd.f32 %v667_v38, %v627_v34 }
 0x118   : > { %v467_v23 = vpop.f32.mrf.mxu0 }
 0x119   : > { %v628_v42 = vmul.f32 %v467_v23, %v467_v23  ;;  %v1111_v37 = vpop.f32.mrf.mxu1  ;;  %v579_v47 = vadd.f32 %v578_v39, %v467_v23 }
 0x11a   : > { %v866_v27 = vpop.f32.mrf.mxu0 }
 0x11b   : > { %v910_v51 = vpop.f32.mrf.mxu1  ;;  %v669_v54 = vadd.f32 %v668_v35, %v628_v42 }
 0x11c   : > { %v470_v33 = vpop.f32.mrf.mxu0  ;;  %v645_v51 = vmul.f32 %v1101_v46, %v1101_v46 }
 0x11d   : > { %v629_v50 = vmul.f32 %v470_v33, %v470_v33  ;;  %v580_v55 = vadd.f32 %v579_v47, %v470_v33  ;;  %v1113_v45 = vpop.f32.mrf.mxu1 }
 0x11e   : > { %v867_v43 = vpop.f32.mrf.mxu0 }
 0x11f   : > { %v670_v63 = vadd.f32 %v669_v54, %v629_v50  ;;  %v911_v49 = vpop.f32.mrf.mxu1  ;;  %v643_v43 = vmul.f32 %v1097_v18, %v1097_v18  ;;  %v644_v50 = vmul.f32 %v1099_v30, %v1099_v30 }
 0x120   : > { %v475_v41 = vpop.f32.mrf.mxu0  ;;  %v649_v49 = vmul.f32 %v1109_v29, %v1109_v29 }
 0x121   : > { %v630_v58 = vmul.f32 %v475_v41, %v475_v41  ;;  %v581_v1 = vadd.f32 %v580_v55, %v475_v41 }
 0x122   : > { %v870_v59 = vpop.f32.mrf.mxu0 }
 0x123   : > { %v671_v4 = vadd.f32 %v670_v63, %v630_v58  ;;  %v647_v59 = vmul.f32 %v1105_v9, %v1105_v9 }
 0x124   : > { %v478_v3 = vpop.f32.mrf.mxu0 }
 0x125   : > { %v582_v5 = vadd.f32 %v581_v1, %v478_v3  ;;  %v631_v6 = vmul.f32 %v478_v3, %v478_v3 }
 0x126   : > { %v871_v7 = vpop.f32.mrf.mxu0 }
 0x127   : > { %v583_v10 = vadd.f32 %v582_v5, %v1075_v28  ;;  %v672_v11 = vadd.f32 %v671_v4, %v631_v6  ;;  %v636_v28 = vmul.f32 %v1083_v44, %v1083_v44  ;;  %v650_v5 = vmul.f32 %v1111_v37, %v1111_v37 }
 0x128   : > { %v651_v7 = vmul.f32 %v1113_v45, %v1113_v45 }
 0x129   : > { %v584_v57 = vadd.f32 %v583_v10, %v1077_v32  ;;  %v673_v14 = vadd.f32 %v672_v11, %v632_v53  ;;  %v637_v32 = vmul.f32 %v1085_v48, %v1085_v48 }
 0x12b   : > { %v585_v16 = vadd.f32 %v584_v57, %v1079_v36  ;;  %v674_v17 = vadd.f32 %v673_v14, %v633_v13  ;;  %v638_v36 = vmul.f32 %v1087_v52, %v1087_v52 }
 0x12d   : > { %v586_v20 = vadd.f32 %v585_v16, %v1081_v40  ;;  %v675_v21 = vadd.f32 %v674_v17, %v634_v15  ;;  %v639_v40 = vmul.f32 %v1089_v56, %v1089_v56 }
 0x12f   : > { %v587_v23 = vadd.f32 %v586_v20, %v1083_v44  ;;  %v676_v2 = vadd.f32 %v675_v21, %v635_v61  ;;  %v640_v44 = vmul.f32 %v1091_v60, %v1091_v60 }
 0x131   : > { %v677_v24 = vadd.f32 %v676_v2, %v636_v28  ;;  %v588_v25 = vadd.f32 %v587_v23, %v1085_v48  ;;  %v641_v48 = vmul.f32 %v1093_v0, %v1093_v0 }
 0x133   : > { %v589_v26 = vadd.f32 %v588_v25, %v1087_v52  ;;  %v678_v27 = vadd.f32 %v677_v24, %v637_v32  ;;  %v642_v52 = vmul.f32 %v1095_v8, %v1095_v8 }
 0x135   : > { %v590_v12 = vadd.f32 %v589_v26, %v1089_v56  ;;  %v679_v31 = vadd.f32 %v678_v27, %v638_v36 }
 0x137   : > { %v591_v34 = vadd.f32 %v590_v12, %v1091_v60  ;;  %v680_v33 = vadd.f32 %v679_v31, %v639_v40 }
 0x139   : > { %v592_v22 = vadd.f32 %v591_v34, %v1093_v0  ;;  %v681_v38 = vadd.f32 %v680_v33, %v640_v44 }
 0x13b   : > { %v593_v39 = vadd.f32 %v592_v22, %v1095_v8  ;;  %v682_v42 = vadd.f32 %v681_v38, %v641_v48 }
 0x13d   : > { %v594_v56 = vadd.f32 %v593_v39, %v1097_v18  ;;  %v683_v35 = vadd.f32 %v682_v42, %v642_v52  ;;  %v646_v18 = vmul.f32 %v1103_v62, %v1103_v62 }
 0x13f   : > { %v684_v60 = vadd.f32 %v683_v35, %v643_v43  ;;  %v595_v47 = vadd.f32 %v594_v56, %v1099_v30 }
 0x141   : > { %v685_v0 = vadd.f32 %v684_v60, %v644_v50  ;;  %v596_v41 = vadd.f32 %v595_v47, %v1101_v46  ;;  %v648_v46 = vmul.f32 %v1107_v19, %v1107_v19 }
 0x143   : > { %v686_v8 = vadd.f32 %v685_v0, %v645_v51  ;;  %v597_v54 = vadd.f32 %v596_v41, %v1103_v62 }
 0x145   : > { %v687_v55 = vadd.f32 %v686_v8, %v646_v18  ;;  %v598_v58 = vadd.f32 %v597_v54, %v1105_v9 }
 0x147   : > { %v688_v30 = vadd.f32 %v687_v55, %v647_v59  ;;  %v599_v63 = vadd.f32 %v598_v58, %v1107_v19 }
 0x149   : > { %v689_v1 = vadd.f32 %v688_v30, %v648_v46  ;;  %v600_v3 = vadd.f32 %v599_v63, %v1109_v29 }
 0x14b   : > { %v690_v62 = vadd.f32 %v689_v1, %v649_v49  ;;  %v601_v4 = vadd.f32 %v600_v3, %v1111_v37 }
 0x14d   : > { %v691_v9 = vadd.f32 %v690_v62, %v650_v5  ;;  %v602_v6 = vadd.f32 %v601_v4, %v1113_v45 }
 0x14f   : > { %v603_v19 = vrot.slane %v602_v6, 4  ;;  %v692_v53 = vadd.f32 %v691_v9, %v651_v7 }
 0x151   : > { %v604_v10 = vadd.f32 %v603_v19, %v602_v6  ;;  %v693_v11 = vrot.slane %v692_v53, 4 }
 0x153   : > { %v605_v13 = vrot.slane %v604_v10, 2  ;;  %v694_v29 = vadd.f32 %v693_v11, %v692_v53 }
 0x155   : > { %v606_v57 = vadd.f32 %v605_v13, %v604_v10  ;;  %v695_v14 = vrot.slane %v694_v29, 2 }
 0x157   : > { %v607_v15 = vrot.slane %v606_v57, 1  ;;  %v696_v16 = vadd.f32 %v695_v14, %v694_v29 }
 0x159   : > { %v608_v37 = vadd.f32 %v607_v15, %v606_v57  ;;  %v697_v17 = vrot.slane %v696_v16, 1 }
 0x15b   : > { %609 = vst [vmem:[%s143_s21] sm:$0x1] %v608_v37  ;;  %v698_v45 = vadd.f32 %v697_v17, %v696_v16 }
 0x15d   : > { %699 = vst [vmem:[%s143_s21 + $0x1] sm:$0x1] %v698_v45 }
 0x15e PF: > { %s12_s9 = sadd.s32 1, %s951_s9  }
 0x15f   : > { %p9_p5 = scmp.ge.s32.totalorder %s12_s9, 4  }
 0x161   :  { %11 = sbr.rel (!%p9_p5) target bundleno = 1 (0x1), region = 58 }

</bundles_post_ra>
